<compile_context>
chip_gen: v7x
topology: tpu7x:2x2x1
jax: 0.10.0
libtpu: 0.0.40
codegen_flags: <defaults>
</compile_context>

<pallas_src>
import jax
import jax.numpy as jnp
from jax.experimental import pallas as pl
from jax.experimental.pallas import tpu as pltpu

FEAT = 28 * 28   # 784 (kept unpadded: equals full array last dim everywhere)
HID = 100
HID_PAD = 128    # lane-aligned hidden width; padded lanes stay exactly 0


def autoencoder_kernel(x_ref,
                       w1_ref, b1_ref,
                       w2_ref, b2_ref,
                       w3_ref, b3_ref,
                       w4_ref, b4_ref,
                       o_ref):
    # 4-layer MLP on one (tb, 784) batch tile. All matmuls run on the MXU in
    # bf16 with f32 accumulation; bias add + ReLU stay in f32 on the VPU.
    x = x_ref[...].astype(jnp.bfloat16)   # cast fused into the kernel (x stays f32 in HBM)

    h = jnp.dot(x, w1_ref[...], preferred_element_type=jnp.float32)
    h = jnp.maximum(h + b1_ref[...], 0.0)

    h = jnp.dot(h.astype(jnp.bfloat16), w2_ref[...],
                preferred_element_type=jnp.float32)
    h = jnp.maximum(h + b2_ref[...], 0.0)

    h = jnp.dot(h.astype(jnp.bfloat16), w3_ref[...],
                preferred_element_type=jnp.float32)
    h = jnp.maximum(h + b3_ref[...], 0.0)

    h = jnp.dot(h.astype(jnp.bfloat16), w4_ref[...],
                preferred_element_type=jnp.float32)
    h = jnp.maximum(h + b4_ref[...], 0.0)

    o_ref[...] = h.astype(o_ref.dtype)


def _pad2d(a, shape, dtype):
    out = jnp.zeros(shape, dtype)
    return out.at[: a.shape[0], : a.shape[1]].set(a.astype(dtype))


def _round_up(n, m):
    return ((n + m - 1) // m) * m


def autoencoder_forward(x, params, tb_cap=512):
    """x: (B, 784) float32. params: 4x (W (in,out), b (1,out)). Returns (B, 784) f32."""
    (w1, b1), (w2, b2), (w3, b3), (w4, b4) = params
    B = x.shape[0]

    # Adaptive batch tile: small batches aren't padded to a huge tile; large
    # batches use tb_cap-row tiles (grid >= 2 -> both v7x TCs participate).
    B_pad = _round_up(B, 8)
    tb = min(tb_cap, B_pad)
    B_pad = _round_up(B_pad, tb)
    if B_pad != B:
        x = jnp.pad(x, ((0, B_pad - B), (0, 0)))

    # Only the small weight/bias tensors are padded (hidden 100 -> 128) and
    # cast to bf16 in the wrapper; this is one-time, tiny HBM traffic. Padded
    # rows/cols are zero, so padded hidden lanes stay 0 through bias+ReLU.
    w1p = _pad2d(w1, (FEAT, HID_PAD), jnp.bfloat16)
    w2p = _pad2d(w2, (HID_PAD, HID_PAD), jnp.bfloat16)
    w3p = _pad2d(w3, (HID_PAD, HID_PAD), jnp.bfloat16)
    w4p = _pad2d(w4, (HID_PAD, FEAT), jnp.bfloat16)
    b1p = _pad2d(b1, (1, HID_PAD), jnp.float32)
    b2p = _pad2d(b2, (1, HID_PAD), jnp.float32)
    b3p = _pad2d(b3, (1, HID_PAD), jnp.float32)
    b4p = b4.astype(jnp.float32)           # (1, 784), no padding needed

    grid = (B_pad // tb,)
    const = lambda i: (0, 0)

    # Weights/biases use a constant index_map -> DMA'd once, resident in VMEM
    # across all batch tiles. x/out tiles are streamed and double-buffered.
    out = pl.pallas_call(
        autoencoder_kernel,
        out_shape=jax.ShapeDtypeStruct((B_pad, FEAT), jnp.float32),
        grid_spec=pltpu.PrefetchScalarGridSpec(
            num_scalar_prefetch=0,
            grid=grid,
            in_specs=[
                pl.BlockSpec((tb, FEAT), lambda i: (i, 0)),
                pl.BlockSpec((FEAT, HID_PAD), const),
                pl.BlockSpec((1, HID_PAD), const),
                pl.BlockSpec((HID_PAD, HID_PAD), const),
                pl.BlockSpec((1, HID_PAD), const),
                pl.BlockSpec((HID_PAD, HID_PAD), const),
                pl.BlockSpec((1, HID_PAD), const),
                pl.BlockSpec((HID_PAD, FEAT), const),
                pl.BlockSpec((1, FEAT), const),
            ],
            out_specs=pl.BlockSpec((tb, FEAT), lambda i: (i, 0)),
        ),
        compiler_params=pltpu.CompilerParams(
            dimension_semantics=("parallel",),   # shard batch tiles across TCs on v7x
        ),
    )(x, w1p, b1p, w2p, b2p, w3p, b3p, w4p, b4p)

    if B_pad != B:
        out = out[:B]
    return out


def init_linear(key, fan_in, fan_out):
    # Mimic PyTorch nn.Linear default init: U(-1/sqrt(fan_in), 1/sqrt(fan_in)).
    kw, kb = jax.random.split(key)
    bound = 1.0 / (fan_in ** 0.5)
    # Stored as (in, out) so the kernel computes x @ W.
    w = jax.random.uniform(kw, (fan_in, fan_out), jnp.float32, -bound, bound)
    b = jax.random.uniform(kb, (1, fan_out), jnp.float32, -bound, bound)
    return w, b


def reference_forward(x, params):
    h = x
    for w, b in params:
        h = jnp.maximum(h @ w + b, 0.0)
    return h


if __name__ == "__main__":
    key = jax.random.PRNGKey(0)
    k_x, k1, k2, k3, k4 = jax.random.split(key, 5)

    batch = 8
    x = jax.random.uniform(k_x, (batch, FEAT), jnp.float32)  # MNIST-like inputs in [0,1)

    params = (
        init_linear(k1, FEAT, HID),   # encoder linear 1
        init_linear(k2, HID, HID),    # encoder linear 2
        init_linear(k3, HID, HID),    # decoder linear 1
        init_linear(k4, HID, FEAT),   # decoder linear 2
    )

    out = autoencoder_forward(x, params)
    out = jax.block_until_ready(out)

    ref = reference_forward(x, params)  # f32 reference
    assert out.shape == (batch, FEAT), out.shape
    # bf16 matmuls with f32 accumulation -> loosen tolerance vs the f32 reference.
    err = float(jnp.max(jnp.abs(out - ref)))
    assert jnp.allclose(out, ref, atol=2e-2, rtol=2e-2), err

    print("KERNEL_OK")
</pallas_src>

<mosaic_0001>
module attributes {stable_mosaic.version = 11 : i64} {
  func.func @autoencoder_kernel(%arg0: i32, %arg1: memref<8x784xf32, #tpu.memory_space<vmem>>, %arg2: memref<784x128xbf16, #tpu.memory_space<vmem>>, %arg3: memref<1x128xf32, #tpu.memory_space<vmem>>, %arg4: memref<128x128xbf16, #tpu.memory_space<vmem>>, %arg5: memref<1x128xf32, #tpu.memory_space<vmem>>, %arg6: memref<128x128xbf16, #tpu.memory_space<vmem>>, %arg7: memref<1x128xf32, #tpu.memory_space<vmem>>, %arg8: memref<128x784xbf16, #tpu.memory_space<vmem>>, %arg9: memref<1x784xf32, #tpu.memory_space<vmem>>, %arg10: memref<8x784xf32, #tpu.memory_space<vmem>>) attributes {dimension_semantics = [#tpu.dimension_semantics<parallel>], iteration_bounds = array<i64: 1>, scalar_prefetch = 0 : i64, scratch_operands = 0 : i64, tpu.core_type = #tpu.core_type<tc>, window_params = [{transform_indices = @transform_0, window_bounds = array<i64: 8, 784>}, {pipeline_mode = #tpu.pipeline_mode<synchronous>, transform_indices = @transform_1, window_bounds = array<i64: 784, 128>}, {pipeline_mode = #tpu.pipeline_mode<synchronous>, transform_indices = @transform_2, window_bounds = array<i64: 1, 128>}, {pipeline_mode = #tpu.pipeline_mode<synchronous>, transform_indices = @transform_3, window_bounds = array<i64: 128, 128>}, {pipeline_mode = #tpu.pipeline_mode<synchronous>, transform_indices = @transform_4, window_bounds = array<i64: 1, 128>}, {pipeline_mode = #tpu.pipeline_mode<synchronous>, transform_indices = @transform_5, window_bounds = array<i64: 128, 128>}, {pipeline_mode = #tpu.pipeline_mode<synchronous>, transform_indices = @transform_6, window_bounds = array<i64: 1, 128>}, {pipeline_mode = #tpu.pipeline_mode<synchronous>, transform_indices = @transform_7, window_bounds = array<i64: 128, 784>}, {pipeline_mode = #tpu.pipeline_mode<synchronous>, transform_indices = @transform_8, window_bounds = array<i64: 1, 784>}, {transform_indices = @transform_9, window_bounds = array<i64: 8, 784>}]} {
    %c0 = arith.constant 0 : index
    %c0_0 = arith.constant 0 : index
    %0 = vector.load %arg1[%c0, %c0_0] : memref<8x784xf32, #tpu.memory_space<vmem>>, vector<8x784xf32>
    %1 = arith.truncf %0 : vector<8x784xf32> to vector<8x784xbf16>
    %c0_1 = arith.constant 0 : index
    %c0_2 = arith.constant 0 : index
    %2 = vector.load %arg2[%c0_1, %c0_2] : memref<784x128xbf16, #tpu.memory_space<vmem>>, vector<784x128xbf16>
    %cst = arith.constant dense<0.000000e+00> : vector<8x128xf32>
    %3 = tpu.matmul %1, %2, %cst {dimension_numbers = #tpu.dot_dimension_numbers<[1], [0], [0], [1], [0, 0, 1, 1], [], []>} : vector<8x784xbf16>, vector<784x128xbf16>, vector<8x128xf32> -> vector<8x128xf32>
    %c0_3 = arith.constant 0 : index
    %c0_4 = arith.constant 0 : index
    %4 = vector.load %arg3[%c0_3, %c0_4] : memref<1x128xf32, #tpu.memory_space<vmem>>, vector<1x128xf32>
    %5 = vector.broadcast %4 : vector<1x128xf32> to vector<8x128xf32>
    %6 = arith.addf %3, %5 : vector<8x128xf32>
    %cst_5 = arith.constant 0.000000e+00 : f32
    %7 = vector.broadcast %cst_5 : f32 to vector<8x128xf32>
    %8 = arith.maximumf %6, %7 : vector<8x128xf32>
    %9 = arith.truncf %8 : vector<8x128xf32> to vector<8x128xbf16>
    %c0_6 = arith.constant 0 : index
    %c0_7 = arith.constant 0 : index
    %10 = vector.load %arg4[%c0_6, %c0_7] : memref<128x128xbf16, #tpu.memory_space<vmem>>, vector<128x128xbf16>
    %cst_8 = arith.constant dense<0.000000e+00> : vector<8x128xf32>
    %11 = tpu.matmul %9, %10, %cst_8 {dimension_numbers = #tpu.dot_dimension_numbers<[1], [0], [0], [1], [0, 0, 1, 1], [], []>} : vector<8x128xbf16>, vector<128x128xbf16>, vector<8x128xf32> -> vector<8x128xf32>
    %c0_9 = arith.constant 0 : index
    %c0_10 = arith.constant 0 : index
    %12 = vector.load %arg5[%c0_9, %c0_10] : memref<1x128xf32, #tpu.memory_space<vmem>>, vector<1x128xf32>
    %13 = vector.broadcast %12 : vector<1x128xf32> to vector<8x128xf32>
    %14 = arith.addf %11, %13 : vector<8x128xf32>
    %cst_11 = arith.constant 0.000000e+00 : f32
    %15 = vector.broadcast %cst_11 : f32 to vector<8x128xf32>
    %16 = arith.maximumf %14, %15 : vector<8x128xf32>
    %17 = arith.truncf %16 : vector<8x128xf32> to vector<8x128xbf16>
    %c0_12 = arith.constant 0 : index
    %c0_13 = arith.constant 0 : index
    %18 = vector.load %arg6[%c0_12, %c0_13] : memref<128x128xbf16, #tpu.memory_space<vmem>>, vector<128x128xbf16>
    %cst_14 = arith.constant dense<0.000000e+00> : vector<8x128xf32>
    %19 = tpu.matmul %17, %18, %cst_14 {dimension_numbers = #tpu.dot_dimension_numbers<[1], [0], [0], [1], [0, 0, 1, 1], [], []>} : vector<8x128xbf16>, vector<128x128xbf16>, vector<8x128xf32> -> vector<8x128xf32>
    %c0_15 = arith.constant 0 : index
    %c0_16 = arith.constant 0 : index
    %20 = vector.load %arg7[%c0_15, %c0_16] : memref<1x128xf32, #tpu.memory_space<vmem>>, vector<1x128xf32>
    %21 = vector.broadcast %20 : vector<1x128xf32> to vector<8x128xf32>
    %22 = arith.addf %19, %21 : vector<8x128xf32>
    %cst_17 = arith.constant 0.000000e+00 : f32
    %23 = vector.broadcast %cst_17 : f32 to vector<8x128xf32>
    %24 = arith.maximumf %22, %23 : vector<8x128xf32>
    %25 = arith.truncf %24 : vector<8x128xf32> to vector<8x128xbf16>
    %c0_18 = arith.constant 0 : index
    %c0_19 = arith.constant 0 : index
    %26 = vector.load %arg8[%c0_18, %c0_19] : memref<128x784xbf16, #tpu.memory_space<vmem>>, vector<128x784xbf16>
    %cst_20 = arith.constant dense<0.000000e+00> : vector<8x784xf32>
    %27 = tpu.matmul %25, %26, %cst_20 {dimension_numbers = #tpu.dot_dimension_numbers<[1], [0], [0], [1], [0, 0, 1, 1], [], []>} : vector<8x128xbf16>, vector<128x784xbf16>, vector<8x784xf32> -> vector<8x784xf32>
    %c0_21 = arith.constant 0 : index
    %c0_22 = arith.constant 0 : index
    %28 = vector.load %arg9[%c0_21, %c0_22] : memref<1x784xf32, #tpu.memory_space<vmem>>, vector<1x784xf32>
    %29 = vector.broadcast %28 : vector<1x784xf32> to vector<8x784xf32>
    %30 = arith.addf %27, %29 : vector<8x784xf32>
    %cst_23 = arith.constant 0.000000e+00 : f32
    %31 = vector.broadcast %cst_23 : f32 to vector<8x784xf32>
    %32 = arith.maximumf %30, %31 : vector<8x784xf32>
    %c0_24 = arith.constant 0 : index
    %c0_25 = arith.constant 0 : index
    %33 = vector.load %arg10[%c0_24, %c0_25] : memref<8x784xf32, #tpu.memory_space<vmem>>, vector<8x784xf32>
    tpu.vector_store %arg10[%c0_24, %c0_25], %32 {strides = array<i32>} : memref<8x784xf32, #tpu.memory_space<vmem>>, vector<8x784xf32>,
    return
  }
  func.func @transform_0(%arg0: i32) -> (i32, i32) {
    %c0_i32 = arith.constant 0 : i32
    %c0_i32_0 = arith.constant 0 : i32
    return %arg0, %c0_i32 : i32, i32
  }
  func.func @transform_1(%arg0: i32) -> (i32, i32) {
    %c0_i32 = arith.constant 0 : i32
    %c0_i32_0 = arith.constant 0 : i32
    %c0_i32_1 = arith.constant 0 : i32
    return %c0_i32, %c0_i32_0 : i32, i32
  }
  func.func @transform_2(%arg0: i32) -> (i32, i32) {
    %c0_i32 = arith.constant 0 : i32
    %c0_i32_0 = arith.constant 0 : i32
    %c0_i32_1 = arith.constant 0 : i32
    return %c0_i32, %c0_i32_0 : i32, i32
  }
  func.func @transform_3(%arg0: i32) -> (i32, i32) {
    %c0_i32 = arith.constant 0 : i32
    %c0_i32_0 = arith.constant 0 : i32
    %c0_i32_1 = arith.constant 0 : i32
    return %c0_i32, %c0_i32_0 : i32, i32
  }
  func.func @transform_4(%arg0: i32) -> (i32, i32) {
    %c0_i32 = arith.constant 0 : i32
    %c0_i32_0 = arith.constant 0 : i32
    %c0_i32_1 = arith.constant 0 : i32
    return %c0_i32, %c0_i32_0 : i32, i32
  }
  func.func @transform_5(%arg0: i32) -> (i32, i32) {
    %c0_i32 = arith.constant 0 : i32
    %c0_i32_0 = arith.constant 0 : i32
    %c0_i32_1 = arith.constant 0 : i32
    return %c0_i32, %c0_i32_0 : i32, i32
  }
  func.func @transform_6(%arg0: i32) -> (i32, i32) {
    %c0_i32 = arith.constant 0 : i32
    %c0_i32_0 = arith.constant 0 : i32
    %c0_i32_1 = arith.constant 0 : i32
    return %c0_i32, %c0_i32_0 : i32, i32
  }
  func.func @transform_7(%arg0: i32) -> (i32, i32) {
    %c0_i32 = arith.constant 0 : i32
    %c0_i32_0 = arith.constant 0 : i32
    %c0_i32_1 = arith.constant 0 : i32
    return %c0_i32, %c0_i32_0 : i32, i32
  }
  func.func @transform_8(%arg0: i32) -> (i32, i32) {
    %c0_i32 = arith.constant 0 : i32
    %c0_i32_0 = arith.constant 0 : i32
    %c0_i32_1 = arith.constant 0 : i32
    return %c0_i32, %c0_i32_0 : i32, i32
  }
  func.func @transform_9(%arg0: i32) -> (i32, i32) {
    %c0_i32 = arith.constant 0 : i32
    %c0_i32_0 = arith.constant 0 : i32
    return %arg0, %c0_i32 : i32, i32
  }
}

</mosaic_0001>

<bundles_post_ra>
// kernel: tpu_custom_call.1
= control target key start
LH: loop header
LB: loop body
LE: loop exit
PB: predicated region body
PF: predicated region fallthrough
CT: control target
= control target key end

     0   :  { %v1878_v44 = vmov 0.0   ;;  %vm1879_vm0 = vmmov 0   ;;  %vm447_vm1 = vcmask 130048   ;;  %s2375_s0 = inlined_call_operand.vmem [shape: f32[8,784], index: 0, kind: input, shape index: {}]   ;;  %s2376_s1 = inlined_call_operand.vmem [shape: bf16[784,128], index: 1, kind: input, shape index: {}]   ;;  %s2377_s2 = inlined_call_operand.vmem [shape: f32[1,128], index: 2, kind: input, shape index: {}]   ;;  %s2378_s3 = inlined_call_operand.vmem [shape: bf16[128,128], index: 3, kind: input, shape index: {}]   ;;  %s2379_s4 = inlined_call_operand.vmem [shape: f32[1,128], index: 4, kind: input, shape index: {}]   ;;  %s2380_s5 = inlined_call_operand.vmem [shape: bf16[128,128], index: 5, kind: input, shape index: {}]   ;;  %s2381_s6 = inlined_call_operand.vmem [shape: f32[1,128], index: 6, kind: input, shape index: {}]   ;;  %s2382_s7 = inlined_call_operand.vmem [shape: bf16[128,784], index: 7, kind: input, shape index: {}]   ;;  %s2383_s8 = inlined_call_operand.vmem [shape: f32[1,784], index: 8, kind: input, shape index: {}]   ;;  %s2384_s9 = inlined_call_operand.hbm [shape: f32[8,784], index: 9, kind: output, shape index: {}]  }
   0x1   :  { %v1709_v0 = vld [vmem:[%s2376_s1 + $0x40] sm:$0xff]   ;;  %v1713_v4 = vld [vmem:[%s2376_s1 + $0x48] sm:$0xff]   ;;  %v1717_v8 = vld [vmem:[%s2376_s1 + $0x50] sm:$0xff]  }
   0x2   :  { %v1710_v1 = vld [vmem:[%s2376_s1] sm:$0xff]   ;;  %1544 = vmatprep.subr.bf16.mxu0 %v1709_v0  ;;  %v1714_v5 = vld [vmem:[%s2376_s1 + $0x8] sm:$0xff]   ;;  %v1718_v9 = vld [vmem:[%s2376_s1 + $0x10] sm:$0xff]  }
   0x3   :  { %v1711_v2 = vld [vmem:[%s2376_s1 + $0xc0] sm:$0xff]   ;;  %1545 = vmatpush3.bf16.msra.mxu0 %v1710_v1  ;;  %v1715_v6 = vld [vmem:[%s2376_s1 + $0xc8] sm:$0xff]   ;;  %v1719_v10 = vld [vmem:[%s2376_s1 + $0xd0] sm:$0xff]  }
   0x4   :  { %v1712_v3 = vld [vmem:[%s2376_s1 + $0x80] sm:$0xff]   ;;  %1566 = vmatprep.subr.bf16.mxu1 %v1711_v2  ;;  %1546 = vmatprep.subr.bf16.mxu0 %v1713_v4  ;;  %v1716_v7 = vld [vmem:[%s2376_s1 + $0x88] sm:$0xff]   ;;  %v1720_v11 = vld [vmem:[%s2376_s1 + $0x90] sm:$0xff]  }
   0x5   :  { %1567 = vmatpush3.bf16.msra.mxu1 %v1712_v3  ;;  %v1721_v12 = vld [vmem:[%s2376_s1 + $0x58] sm:$0xff]   ;;  %v1725_v16 = vld [vmem:[%s2376_s1 + $0x60] sm:$0xff]   ;;  %v1729_v20 = vld [vmem:[%s2376_s1 + $0x68] sm:$0xff]  }
   0x6   :  { %1568 = vmatprep.subr.bf16.mxu1 %v1715_v6  ;;  %v1722_v13 = vld [vmem:[%s2376_s1 + $0x18] sm:$0xff]   ;;  %v1726_v17 = vld [vmem:[%s2376_s1 + $0x20] sm:$0xff]   ;;  %v1730_v21 = vld [vmem:[%s2376_s1 + $0x28] sm:$0xff]  }
   0x7   :  { %1547 = vmatpush3.bf16.msra.mxu0 %v1714_v5  ;;  %v1723_v14 = vld [vmem:[%s2376_s1 + $0xd8] sm:$0xff]   ;;  %v1727_v18 = vld [vmem:[%s2376_s1 + $0xe0] sm:$0xff]   ;;  %v1731_v22 = vld [vmem:[%s2376_s1 + $0xe8] sm:$0xff]  }
   0x8   :  { %1548 = vmatprep.subr.bf16.mxu0 %v1717_v8  ;;  %v1724_v15 = vld [vmem:[%s2376_s1 + $0x98] sm:$0xff]   ;;  %v1728_v19 = vld [vmem:[%s2376_s1 + $0xa0] sm:$0xff]   ;;  %v1732_v23 = vld [vmem:[%s2376_s1 + $0xa8] sm:$0xff]  }
   0x9   :  { %1569 = vmatpush3.bf16.msra.mxu1 %v1716_v7  ;;  %v1733_v24 = vld [vmem:[%s2376_s1 + $0x70] sm:$0xff]   ;;  %v1737_v28 = vld [vmem:[%s2376_s1 + $0x78] sm:$0xff]   ;;  %v35_v31 = vld [vmem:[%s2375_s0 + $0x8] sm:$0xff] }
   0xa   :  { %1570 = vmatprep.subr.bf16.mxu1 %v1719_v10  ;;  %v1734_v25 = vld [vmem:[%s2376_s1 + $0x30] sm:$0xff]   ;;  %v1738_v29 = vld [vmem:[%s2376_s1 + $0x38] sm:$0xff]   ;;  %v42_v32 = vpack.c.bf16 %v35_v31, %v35_v31  ;;  %v34_v34 = vld [vmem:[%s2375_s0] sm:$0xff] }
   0xb   :  { %1549 = vmatpush3.bf16.msra.mxu0 %v1718_v9  ;;  %v1735_v26 = vld [vmem:[%s2376_s1 + $0xf0] sm:$0xff]   ;;  %v1739_v30 = vld [vmem:[%s2376_s1 + $0xf8] sm:$0xff]   ;;  %v41_v35 = vpack.c.bf16 %v34_v34, %v34_v34  ;;  %v1741_v36 = vld [vmem:[%s2376_s1 + $0x140] sm:$0xff]  }
   0xc   :  { %1550 = vmatprep.subr.bf16.mxu0 %v1721_v12  ;;  %v1736_v27 = vld [vmem:[%s2376_s1 + $0xb0] sm:$0xff]   ;;  %v1740_v33 = vld [vmem:[%s2376_s1 + $0xb8] sm:$0xff]   ;;  %483 = vmatprep.mubr.bf16.mxu0 %v42_v32  ;;  %v1742_v39 = vld [vmem:[%s2376_s1 + $0x100] sm:$0xff]  }
   0xd   :  { %1571 = vmatpush3.bf16.msra.mxu1 %v1720_v11  ;;  %v37_v37 = vld [vmem:[%s2375_s0 + $0x18] sm:$0xff]  ;;  %v36_v40 = vld [vmem:[%s2375_s0 + $0x10] sm:$0xff]  ;;  %v1743_v42 = vld [vmem:[%s2376_s1 + $0x148] sm:$0xff]  }
   0xe   :  { %1572 = vmatprep.subr.bf16.mxu1 %v1723_v14  ;;  %v44_v38 = vpack.c.bf16 %v37_v37, %v37_v37  ;;  %v43_v41 = vpack.c.bf16 %v36_v40, %v36_v40  ;;  %v1744_v43 = vld [vmem:[%s2376_s1 + $0x108] sm:$0xff]   ;;  %v1745_v45 = vld [vmem:[%s2376_s1 + $0x150] sm:$0xff]   ;;  %v1747_v47 = vld [vmem:[%s2376_s1 + $0x158] sm:$0xff]  }
   0xf   :  { %1551 = vmatpush3.bf16.msra.mxu0 %v1722_v13  ;;  %v1746_v46 = vld [vmem:[%s2376_s1 + $0x110] sm:$0xff]   ;;  %v1748_v48 = vld [vmem:[%s2376_s1 + $0x118] sm:$0xff]   ;;  %v1749_v49 = vld [vmem:[%s2376_s1 + $0x160] sm:$0xff]  }
  0x10   :  { %1552 = vmatprep.subr.bf16.mxu0 %v1725_v16  ;;  %523 = vmatprep.mubr.bf16.mxu1 %v44_v38  ;;  %v1750_v50 = vld [vmem:[%s2376_s1 + $0x120] sm:$0xff]   ;;  %v1751_v51 = vld [vmem:[%s2376_s1 + $0x168] sm:$0xff]   ;;  %v1753_v55 = vld [vmem:[%s2376_s1 + $0x170] sm:$0xff]  }
  0x11   :  { %1573 = vmatpush3.bf16.msra.mxu1 %v1724_v15  ;;  %v1752_v52 = vld [vmem:[%s2376_s1 + $0x128] sm:$0xff]   ;;  %v1757_v53 = vld [vmem:[%s2376_s1 + $0x180] sm:$0xff]   ;;  %v40_v57 = vld [vmem:[%s2375_s0 + $0x30] sm:$0xff] }
  0x12   :  { %1574 = vmatprep.subr.bf16.mxu1 %v1727_v18  ;;  %v39_v54 = vld [vmem:[%s2375_s0 + $0x28] sm:$0xff]  ;;  %v47_v58 = vpack.c.bf16 %v40_v57, %v40_v57  ;;  %v1754_v59 = vld [vmem:[%s2376_s1 + $0x130] sm:$0xff]   ;;  %v1755_v60 = vld [vmem:[%s2376_s1 + $0x178] sm:$0xff]  }
  0x13   :  { %1553 = vmatpush3.bf16.msra.mxu0 %v1726_v17  ;;  %v46_v56 = vpack.c.bf16 %v39_v54, %v39_v54  ;;  %v1756_v61 = vld [vmem:[%s2376_s1 + $0x138] sm:$0xff]   ;;  %v38_v62 = vld [vmem:[%s2375_s0 + $0x20] sm:$0xff] }
  0x14   :  { %1554 = vmatprep.subr.bf16.mxu0 %v1729_v20  ;;  %v45_v63 = vpack.c.bf16 %v38_v62, %v38_v62 }
  0x15   :  { %1575 = vmatpush3.bf16.msra.mxu1 %v1728_v19 }
  0x16   :  { %1576 = vmatprep.subr.bf16.mxu1 %v1731_v22 }
  0x17   :  { %1555 = vmatpush3.bf16.msra.mxu0 %v1730_v21 }
  0x18   :  { %1556 = vmatprep.subr.bf16.mxu0 %v1733_v24 }
  0x19   :  { %1577 = vmatpush3.bf16.msra.mxu1 %v1732_v23 }
  0x1a   :  { %1578 = vmatprep.subr.bf16.mxu1 %v1735_v26 }
  0x1b   :  { %1557 = vmatpush3.bf16.msra.mxu0 %v1734_v25 }
  0x1c   :  { %1558 = vmatprep.subr.bf16.mxu0 %v1737_v28 }
  0x1d   :  { %1579 = vmatpush3.bf16.msra.mxu1 %v1736_v27 }
  0x1e   :  { %1580 = vmatprep.subr.bf16.mxu1 %v1739_v30 }
  0x1f   :  { %1559 = vmatpush3.bf16.msra.mxu0 %v1738_v29 }
  0x20   :  { %1588 = vmatprep.subr.bf16.mxu0 %v1741_v36 }
  0x21   :  { %1581 = vmatpush3.bf16.msra.mxu1 %v1740_v33 }
  0x22   :  { %484 = vmatmul.mubr.bf16.vlgmr.msra.gmra.mrb[0].mxu0 %v41_v35  ;;  %1639 = vmatprep.subr.bf16.mxu1 %v1878_v44 }
  0x23   :  { %1589 = vmatpush3.bf16.msra.mxu0 %v1742_v39  ;;  %563 = vmatprep.mubr.bf16.mxu0 %v46_v56 }
  0x24   :  { %524 = vmatmul.mubr.bf16.vlgmr.msra.gmra.mrb[0].mxu1 %v43_v41  ;;  %1590 = vmatprep.subr.bf16.mxu0 %v1743_v42 }
  0x25   :  { %1641 = vmatprep.mubr.msk.bf16.mxu1 %vm1879_vm0, %v1878_v44  ;;  %1640 = vmatpush3.bf16.msra.mxu1 %v1757_v53 }
  0x26   :  { %1645 = vmatprep.subr.bf16.mxu1 %v1878_v44 }
  0x27   :  { %1591 = vmatpush3.bf16.msra.mxu0 %v1744_v43 }
  0x28   :  { %1592 = vmatprep.subr.bf16.mxu0 %v1745_v45 }
  0x2b   :  { %1593 = vmatpush3.bf16.msra.mxu0 %v1746_v46 }
  0x2c   :  { %1594 = vmatprep.subr.bf16.mxu0 %v1747_v47  ;;  %1642 = vmatmul.mubr.msk.bf16.vlgmr.msra.gmra.mrb[4].mxu1 %vm447_vm1, %v47_v58 }
  0x2d   :  { %1661 = vmatprep.mubr.msk.bf16.mxu1 %vm1879_vm0, %v1878_v44 }
  0x2f   :  { %1595 = vmatpush3.bf16.msra.mxu0 %v1748_v48 }
  0x30   :  { %1596 = vmatprep.subr.bf16.mxu0 %v1749_v49 }
  0x33   :  { %1597 = vmatpush3.bf16.msra.mxu0 %v1750_v50 }
  0x34   :  { %1598 = vmatprep.subr.bf16.mxu0 %v1751_v51 }
  0x37   :  { %1599 = vmatpush3.bf16.msra.mxu0 %v1752_v52 }
  0x38   :  { %1600 = vmatprep.subr.bf16.mxu0 %v1753_v55 }
  0x3b   :  { %1601 = vmatpush3.bf16.msra.mxu0 %v1754_v59 }
  0x3c   :  { %1602 = vmatprep.subr.bf16.mxu0 %v1755_v60 }
  0x3f   :  { %1603 = vmatpush3.bf16.msra.mxu0 %v1756_v61 }
  0x40   :  { %1665 = vmatprep.subr.bf16.mxu0 %v1878_v44 }
  0x42   :  { %564 = vmatmul.mubr.bf16.vlgmr.msra.gmra.mrb[4].mxu0 %v45_v63 }
  0x43   :  { %1681 = vmatprep.mubr.msk.bf16.mxu0 %vm1879_vm0, %v1878_v44 }
  0x44   :  { %14 = vsyncpa [#allocation3], 0  ;;  %v1758_v0 = vld [vmem:[%s2378_s3] sm:$0xff]   ;;  %v1759_v1 = vld [vmem:[%s2378_s3 + $0x8] sm:$0xff]  }
  0x45   :  { %1646 = vmatpush3.bf16.msra.mxu1 %v1758_v0  ;;  %v1760_v2 = vld [vmem:[%s2378_s3 + $0x10] sm:$0xff]   ;;  %v1761_v3 = vld [vmem:[%s2378_s3 + $0x18] sm:$0xff]   ;;  %v1762_v4 = vld [vmem:[%s2378_s3 + $0x20] sm:$0xff]  }
  0x46   :  { %1647 = vmatprep.subr.bf16.mxu1 %v1878_v44  ;;  %v1763_v5 = vld [vmem:[%s2378_s3 + $0x28] sm:$0xff]   ;;  %v1764_v6 = vld [vmem:[%s2378_s3 + $0x30] sm:$0xff]   ;;  %v1765_v7 = vld [vmem:[%s2378_s3 + $0x38] sm:$0xff]  }
  0x47   :  { %v1766_v8 = vld [vmem:[%s2380_s5] sm:$0xff]   ;;  %v1767_v9 = vld [vmem:[%s2380_s5 + $0x8] sm:$0xff]   ;;  %v1768_v10 = vld [vmem:[%s2380_s5 + $0x10] sm:$0xff]  }
  0x48   :  { %1666 = vmatpush3.bf16.msra.mxu0 %v1766_v8  ;;  %v1769_v11 = vld [vmem:[%s2380_s5 + $0x18] sm:$0xff]   ;;  %v1770_v12 = vld [vmem:[%s2380_s5 + $0x20] sm:$0xff]   ;;  %v1771_v13 = vld [vmem:[%s2380_s5 + $0x28] sm:$0xff]  }
  0x49   :  { %1648 = vmatpush3.bf16.msra.mxu1 %v1759_v1  ;;  %1667 = vmatprep.subr.bf16.mxu0 %v1878_v44  ;;  %v1419_v15 = vld [vmem:[%s2377_s2] ss:$0 sm:$0xff]  ;;  %v1772_v40 = vld [vmem:[%s2380_s5 + $0x30] sm:$0xff]   ;;  %v1773_v41 = vld [vmem:[%s2380_s5 + $0x38] sm:$0xff]  }
  0x4a   :  { %1649 = vmatprep.subr.bf16.mxu1 %v1878_v44  ;;  %v1774_v42 = vld [vmem:[%s2382_s7] ss:$28 sps:$4 sm:$0xff]   ;;  %v1779_v45 = vld [vmem:[%s2382_s7 + $0xc] ss:$28 sps:$4 sm:$0xff]   ;;  %v1780_v47 = vld [vmem:[%s2382_s7 + $0x38] ss:$28 sps:$4 sm:$0xff]  }
  0x4b   :  { %v1776_v43 = vld [vmem:[%s2382_s7 + $0x4] ss:$28 sps:$4 sm:$0xff]   ;;  %v1782_v46 = vld [vmem:[%s2382_s7 + $0x3c] ss:$28 sps:$4 sm:$0xff]   ;;  %v1788_v48 = vld [vmem:[%s2382_s7 + $0x74] ss:$28 sps:$4 sm:$0xff]  }
  0x4c   :  { %1668 = vmatpush3.bf16.msra.mxu0 %v1767_v9  ;;  %v1786_v49 = vld [vmem:[%s2382_s7 + $0x70] ss:$28 sps:$4 sm:$0xff]   ;;  %v1792_v51 = vld [vmem:[%s2382_s7 + $0xa8] ss:$28 sps:$4 sm:$0xff]   ;;  %v1798_v53 = vld [vmem:[%s2382_s7 + $0xe0] ss:$28 sps:$4 sm:$0xff]  }
  0x4d   :  { %1650 = vmatpush3.bf16.msra.mxu1 %v1760_v2  ;;  %1669 = vmatprep.subr.bf16.mxu0 %v1878_v44  ;;  %v1794_v50 = vld [vmem:[%s2382_s7 + $0xac] ss:$28 sps:$4 sm:$0xff]   ;;  %v1800_v52 = vld [vmem:[%s2382_s7 + $0xe4] ss:$28 sps:$4 sm:$0xff]   ;;  %v1806_v54 = vld [vmem:[%s2382_s7 + $0x11c] ss:$28 sps:$4 sm:$0xff]  }
  0x4e   :  { %1651 = vmatprep.subr.bf16.mxu1 %v1878_v44  ;;  %v1804_v55 = vld [vmem:[%s2382_s7 + $0x118] ss:$28 sps:$4 sm:$0xff]   ;;  %v1810_v57 = vld [vmem:[%s2382_s7 + $0x150] ss:$28 sps:$4 sm:$0xff]   ;;  %v1470_v58 = vld [vmem:[%s2379_s4] ss:$0 sm:$0xff] }
  0x4f   :  { %v1812_v56 = vld [vmem:[%s2382_s7 + $0x154] ss:$28 sps:$4 sm:$0xff]   ;;  %v1777_v1 = vld [vmem:[%s2382_s7 + $0x8] ss:$28 sps:$4 sm:$0xff]  }
  0x50   :  { %1670 = vmatpush3.bf16.msra.mxu0 %v1768_v10  ;;  %v1795_v8 = vld [vmem:[%s2382_s7 + $0xb0] ss:$28 sps:$4 sm:$0xff]   ;;  %v1801_v10 = vld [vmem:[%s2382_s7 + $0xe8] ss:$28 sps:$4 sm:$0xff]  }
  0x51   :  { %1652 = vmatpush3.bf16.msra.mxu1 %v1761_v3  ;;  %1671 = vmatprep.subr.bf16.mxu0 %v1878_v44  ;;  %v1785_v3 = vld [vmem:[%s2382_s7 + $0x44] ss:$28 sps:$4 sm:$0xff]   ;;  %v1803_v9 = vld [vmem:[%s2382_s7 + $0xec] ss:$28 sps:$4 sm:$0xff]  }
  0x52   :  { %1653 = vmatprep.subr.bf16.mxu1 %v1878_v44 }
  0x54   :  { %1672 = vmatpush3.bf16.msra.mxu0 %v1769_v11  ;;  %v1809_v11 = vld [vmem:[%s2382_s7 + $0x124] ss:$28 sps:$4 sm:$0xff]  }
  0x55   :  { %1654 = vmatpush3.bf16.msra.mxu1 %v1762_v4  ;;  %1673 = vmatprep.subr.bf16.mxu0 %v1878_v44  ;;  %v1783_v4 = vld [vmem:[%s2382_s7 + $0x40] ss:$28 sps:$4 sm:$0xff]  }
  0x56   :  { %1655 = vmatprep.subr.bf16.mxu1 %v1878_v44 }
  0x58   :  { %1674 = vmatpush3.bf16.msra.mxu0 %v1770_v12  ;;  %v1807_v12 = vld [vmem:[%s2382_s7 + $0x120] ss:$28 sps:$4 sm:$0xff]  }
  0x59   :  { %1656 = vmatpush3.bf16.msra.mxu1 %v1763_v5  ;;  %1675 = vmatprep.subr.bf16.mxu0 %v1878_v44  ;;  %v1791_v5 = vld [vmem:[%s2382_s7 + $0x7c] ss:$28 sps:$4 sm:$0xff]  }
  0x5a   :  { %1657 = vmatprep.subr.bf16.mxu1 %v1878_v44 }
  0x5c   :  { %1676 = vmatpush3.bf16.msra.mxu0 %v1771_v13  ;;  %v1815_v13 = vld [vmem:[%s2382_s7 + $0x15c] ss:$28 sps:$4 sm:$0xff]  }
  0x5d   :  { %1658 = vmatpush3.bf16.msra.mxu1 %v1764_v6  ;;  %1677 = vmatprep.subr.bf16.mxu0 %v1878_v44  ;;  %v1789_v6 = vld [vmem:[%s2382_s7 + $0x78] ss:$28 sps:$4 sm:$0xff]  }
  0x5e   :  { %1659 = vmatprep.subr.bf16.mxu1 %v1878_v44 }
  0x60   :  { %1678 = vmatpush3.bf16.msra.mxu0 %v1772_v40  ;;  %v1840_v40 = vld [vmem:[%s2382_s7 + $0xf4] ss:$28 sps:$4 sm:$0xff]  }
  0x61   :  { %1660 = vmatpush3.bf16.msra.mxu1 %v1765_v7  ;;  %1679 = vmatprep.subr.bf16.mxu0 %v1878_v44  ;;  %v1797_v7 = vld [vmem:[%s2382_s7 + $0xb4] ss:$28 sps:$4 sm:$0xff]  }
  0x62   :  { %1228 = vmatprep.subr.bf16.mxu1 %v1776_v43  ;;  %v1844_v43 = vld [vmem:[%s2382_s7 + $0x12c] ss:$28 sps:$4 sm:$0xff]  }
  0x64   :  { %1680 = vmatpush3.bf16.msra.mxu0 %v1773_v41  ;;  %v1838_v41 = vld [vmem:[%s2382_s7 + $0xf0] ss:$28 sps:$4 sm:$0xff]  }
  0x65   :  { %1269 = vmatprep.subr.bf16.mxu0 %v1779_v45  ;;  %v1842_v45 = vld [vmem:[%s2382_s7 + $0x128] ss:$28 sps:$4 sm:$0xff]  }
  0xf5   :  { %v1560_v14 = vpop.f32.mrb[0].mxu0 }
  0xf6   :  { %v1561_v16 = vpop.f32.mrb[1].mxu0 }
  0xf7   :  { %v1562_v17 = vadd.f32 %v1561_v16, %v1560_v14  ;;  %v1563_v18 = vpop.f32.mrb[2].mxu0  ;;  %v1582_v19 = vpop.f32.mrb[0].mxu1  ;;  %v1813_v14 = vld [vmem:[%s2382_s7 + $0x158] ss:$28 sps:$4 sm:$0xff]  }
  0xf8   :  { %v1564_v20 = vpop.f32.mrb[3].mxu0  ;;  %v1583_v22 = vpop.f32.mrb[1].mxu1  ;;  %v1821_v16 = vld [vmem:[%s2382_s7 + $0x194] ss:$28 sps:$4 sm:$0xff]  }
  0xf9   :  { %v486_v21 = vadd.f32 %v1562_v17, %v1419_v15  ;;  %v1584_v23 = vadd.f32 %v1583_v22, %v1582_v19  ;;  %v1585_v24 = vpop.f32.mrb[2].mxu1  ;;  %v1818_v15 = vld [vmem:[%s2382_s7 + $0x18c] ss:$28 sps:$4 sm:$0xff]   ;;  %v1824_v19 = vld [vmem:[%s2382_s7 + $0x14] ss:$28 sps:$4 sm:$0xff]   ;;  %v1880_v20 = vmov 0  }
  0xfa   :  { %v1586_v25 = vpop.f32.mrb[3].mxu1  ;;  %v1816_v17 = vld [vmem:[%s2382_s7 + $0x188] ss:$28 sps:$4 sm:$0xff]   ;;  %v1819_v18 = vld [vmem:[%s2382_s7 + $0x190] ss:$28 sps:$4 sm:$0xff]  }
  0xfb   :  { %v526_v26 = vadd.f32 %v1584_v23, %v486_v21  ;;  %v1479_v21 = vld [vmem:[%s2381_s6] ss:$0 sm:$0xff] }
  0xff   :  { %v605_v27 = vpop.f32.mrb[4].mxu1 }
 0x100   :  { %v1643_v28 = vpop.f32.mrb[5].mxu1 }
 0x101   :  { %v608_v29 = vpop.f32.mrb[6].mxu1  ;;  %v1822_v28 = vld [vmem:[%s2382_s7 + $0x10] ss:$28 sps:$4 sm:$0xff]  }
 0x102   :  { %v1644_v30 = vpop.f32.mrb[7].mxu1  ;;  %v1825_v29 = vld [vmem:[%s2382_s7 + $0x18] ss:$28 sps:$4 sm:$0xff]  }
 0x115   :  { %v1604_v31 = vpop.f32.mrb[4].mxu0 }
 0x116   :  { %v1605_v32 = vpop.f32.mrb[5].mxu0 }
 0x117   :  { %v1606_v33 = vadd.f32 %v1605_v32, %v1604_v31  ;;  %v1607_v34 = vpop.f32.mrb[6].mxu0  ;;  %v1828_v31 = vld [vmem:[%s2382_s7 + $0x4c] ss:$28 sps:$4 sm:$0xff]  }
 0x118   :  { %v1608_v35 = vpop.f32.mrb[7].mxu0  ;;  %v1826_v32 = vld [vmem:[%s2382_s7 + $0x48] ss:$28 sps:$4 sm:$0xff]  }
 0x119   :  { %v566_v36 = vadd.f32 %v1606_v33, %v526_v26  ;;  %v1829_v33 = vld [vmem:[%s2382_s7 + $0x50] ss:$28 sps:$4 sm:$0xff]   ;;  %v1832_v34 = vld [vmem:[%s2382_s7 + $0x84] ss:$28 sps:$4 sm:$0xff]  }
 0x11a   :  { %v1830_v35 = vld [vmem:[%s2382_s7 + $0x80] ss:$28 sps:$4 sm:$0xff]  }
 0x11b   :  { %v606_v37 = vadd.f32 %v605_v27, %v566_v36  ;;  %v1833_v36 = vld [vmem:[%s2382_s7 + $0x88] ss:$28 sps:$4 sm:$0xff]  }
 0x11d   :  { %v611_v38 = vmax.f32 %v606_v37, 0.0  ;;  %v1836_v37 = vld [vmem:[%s2382_s7 + $0xbc] ss:$28 sps:$4 sm:$0xff]  }
 0x11f   :  { %v612_v39 = vpack.c.bf16 %v611_v38, %v611_v38  ;;  %v1834_v38 = vld [vmem:[%s2382_s7 + $0xb8] ss:$28 sps:$4 sm:$0xff]  }
 0x121   :  { %1662 = vmatmul.mubr.bf16.vlgmr.msra.gmra.mrb[8].mxu1 %v612_v39  ;;  %v1837_v39 = vld [vmem:[%s2382_s7 + $0xc0] ss:$28 sps:$4 sm:$0xff]  }
 0x122   :  { %1229 = vmatpush1.bf16.msra.mxu1 %v1774_v42  ;;  %1260 = vmatprep.mubr.bf16.mxu1 %v1880_v20  ;;  %v1841_v42 = vld [vmem:[%s2382_s7 + $0xf8] ss:$28 sps:$4 sm:$0xff]  }
 0x123   :  { %1230 = vmatprep.subr.bf16.mxu1 %v1782_v46  ;;  %v1845_v46 = vld [vmem:[%s2382_s7 + $0x130] ss:$28 sps:$4 sm:$0xff]  }
 0x126   :  { %1231 = vmatpush1.bf16.msra.mxu1 %v1780_v47  ;;  %v1848_v47 = vld [vmem:[%s2382_s7 + $0x164] ss:$28 sps:$4 sm:$0xff]  }
 0x127   :  { %1232 = vmatprep.subr.bf16.mxu1 %v1788_v48  ;;  %v1846_v48 = vld [vmem:[%s2382_s7 + $0x160] ss:$28 sps:$4 sm:$0xff]  }
 0x12a   :  { %1233 = vmatpush1.bf16.msra.mxu1 %v1786_v49  ;;  %v1849_v49 = vld [vmem:[%s2382_s7 + $0x168] ss:$28 sps:$4 sm:$0xff]  }
 0x12b   :  { %1234 = vmatprep.subr.bf16.mxu1 %v1794_v50  ;;  %v1852_v50 = vld [vmem:[%s2382_s7 + $0x19c] ss:$28 sps:$4 sm:$0xff]  }
 0x12e   :  { %1235 = vmatpush1.bf16.msra.mxu1 %v1792_v51  ;;  %v1850_v51 = vld [vmem:[%s2382_s7 + $0x198] ss:$28 sps:$4 sm:$0xff]  }
 0x12f   :  { %1236 = vmatprep.subr.bf16.mxu1 %v1800_v52  ;;  %v1853_v52 = vld [vmem:[%s2382_s7 + $0x1a0] ss:$28 sps:$4 sm:$0xff]   ;;  %s1881_s7 = smov [#allocation2]  }
 0x132   :  { %1237 = vmatpush1.bf16.msra.mxu1 %v1798_v53  ;;  %v905_v53 = vlaneseq }
 0x133   :  { %1238 = vmatprep.subr.bf16.mxu1 %v1806_v54 }
 0x134   :  { %v906_v54 = vshrl.u32 %v905_v53, 7 }
 0x136   :  { %1239 = vmatpush1.bf16.msra.mxu1 %v1804_v55  ;;  %v907_v55 = vsub.s32 0, %v906_v54 }
 0x137   :  { %1240 = vmatprep.subr.bf16.mxu1 %v1812_v56  ;;  %v915_v56 = vsub.s32 2, %v906_v54 }
 0x13a   :  { %1241 = vmatpush1.bf16.msra.mxu1 %v1810_v57  ;;  %v903_v57 = vld [vmem:[%s2383_s8] sm:$0x7f]  ;;  %s1411_s8 = sshll.u32 %s1881_s7, 4  ;;  %s1412_s8 = int_to_ptr.vmem [resolvable:$true] %s1411_s8 }
 0x13b   :  { %1242 = vmatprep.subr.bf16.mxu1 %v1818_v15  ;;  %v923_v15 = vsub.s32 4, %v906_v54  ;;  %s1854_s10 = scalar_lea.vmem %s1412_s8, 896  ;;  %p1859_p1 = scmp.lt.s32.totalorder %s1412_s8, %s1412_s8 }
 0x13c   :  { %p1855_p0 = scmp.ne.s32.totalorder %s1412_s8, %s1854_s10  ;;  %p1860_p2 = scmp.lt.s32.totalorder %s1854_s10, %s1854_s10 }
 0x13e   :  { %1243 = vmatpush1.bf16.msra.mxu1 %v1816_v17  ;;  %v927_v17 = vsub.s32 5, %v906_v54  ;;  %p1861_p3 = por %p1860_p2, %p1859_p1 }
 0x13f   :  { %1310 = vmatprep.subr.bf16.mxu1 %v1824_v19 }
 0x140   :  { %p1862_p4 = pnand %p1861_p3, %p1855_p0 }
 0x1f4   :  { %v718_v59 = vpop.f32.mrb[8].mxu1 }
 0x1f5   :  { %v719_v60 = vadd.f32 %v1470_v58, %v718_v59  ;;  %v1663_v61 = vpop.f32.mrb[9].mxu1  ;;  %v911_v58 = vsub.s32 1, %v906_v54  ;;  %v919_v59 = vsub.s32 3, %v906_v54 }
 0x1f6   :  { %v721_v62 = vpop.f32.mrb[10].mxu1  ;;  %v916_v61 = vrot.slane %v903_v57, %v915_v56 }
 0x1f7   :  { %v724_v63 = vmax.f32 %v719_v60, 0.0  ;;  %v1664_v0 = vpop.f32.mrb[11].mxu1  ;;  %v908_v60 = vrot.slane %v903_v57, %v907_v55  ;;  %v912_v62 = vrot.slane %v903_v57, %v911_v58 }
 0x1f9   :  { %v725_v2 = vpack.c.bf16 %v724_v63, %v724_v63  ;;  %v920_v63 = vrot.slane %v903_v57, %v919_v59 }
 0x1fb   :  { %1682 = vmatmul.mubr.bf16.vlgmr.msra.gmra.mrb[8].mxu0 %v725_v2 }
 0x1fc   :  { %1270 = vmatpush1.bf16.msra.mxu0 %v1777_v1  ;;  %1301 = vmatprep.mubr.bf16.mxu0 %v1880_v20 }
 0x1fd   :  { %1271 = vmatprep.subr.bf16.mxu0 %v1785_v3 }
 0x200   :  { %1272 = vmatpush1.bf16.msra.mxu0 %v1783_v4 }
 0x201   :  { %1273 = vmatprep.subr.bf16.mxu0 %v1791_v5 }
 0x204   :  { %1274 = vmatpush1.bf16.msra.mxu0 %v1789_v6 }
 0x205   :  { %1275 = vmatprep.subr.bf16.mxu0 %v1797_v7 }
 0x208   :  { %1276 = vmatpush1.bf16.msra.mxu0 %v1795_v8 }
 0x209   :  { %1277 = vmatprep.subr.bf16.mxu0 %v1803_v9 }
 0x20c   :  { %1278 = vmatpush1.bf16.msra.mxu0 %v1801_v10 }
 0x20d   :  { %1279 = vmatprep.subr.bf16.mxu0 %v1809_v11 }
 0x210   :  { %1280 = vmatpush1.bf16.msra.mxu0 %v1807_v12 }
 0x211   :  { %1281 = vmatprep.subr.bf16.mxu0 %v1815_v13 }
 0x214   :  { %1282 = vmatpush1.bf16.msra.mxu0 %v1813_v14 }
 0x215   :  { %1283 = vmatprep.subr.bf16.mxu0 %v1821_v16  ;;  %v931_v16 = vsub.s32 6, %v906_v54 }
 0x217   :  { %v932_v19 = vrot.slane %v903_v57, %v931_v16 }
 0x218   :  { %1284 = vmatpush1.bf16.msra.mxu0 %v1819_v18  ;;  %v924_v18 = vrot.slane %v903_v57, %v923_v15 }
 0x219   :  { %1685 = vmatprep.subr.bf16.mxu0 %v1878_v44 }
 0x2ce   :  { %v831_v22 = vpop.f32.mrb[8].mxu0 }
 0x2cf   :  { %v832_v23 = vadd.f32 %v1479_v21, %v831_v22  ;;  %v1683_v24 = vpop.f32.mrb[9].mxu0 }
 0x2d0   :  { %v834_v25 = vpop.f32.mrb[10].mxu0 }
 0x2d1   :  { %v837_v26 = vmax.f32 %v832_v23, 0.0  ;;  %v1684_v27 = vpop.f32.mrb[11].mxu0 }
 0x2d3   :  { %v838_v30 = vpack.c.bf16 %v837_v26, %v837_v26 }
 0x2d5   :  { %1261 = vmatmul.mubr.bf16.vlgmr.msra.gmra.mrb[12].mxu1 %v838_v30  ;;  %1302 = vmatmul.mubr.bf16.vlgmr.msra.gmra.mrb[12].mxu0 %v838_v30 }
 0x2d6   :  { %1311 = vmatpush1.bf16.msra.mxu1 %v1822_v28  ;;  %1686 = vmatpush3.bf16.msra.mxu0 %v1825_v29 }
 0x2d7   :  { %1312 = vmatprep.subr.bf16.mxu1 %v1828_v31  ;;  %1687 = vmatprep.subr.bf16.mxu0 %v1878_v44 }
 0x2d8   :  { %1342 = vmatprep.mubr.bf16.mxu1 %v1880_v20  ;;  %1701 = vmatprep.mubr.msk.bf16.mxu0 %vm1879_vm0, %v1878_v44  ;;  %v928_v20 = vrot.slane %v903_v57, %v927_v17 }
 0x2da   :  { %1313 = vmatpush1.bf16.msra.mxu1 %v1826_v32  ;;  %1688 = vmatpush3.bf16.msra.mxu0 %v1829_v33 }
 0x2db   :  { %1314 = vmatprep.subr.bf16.mxu1 %v1832_v34  ;;  %1689 = vmatprep.subr.bf16.mxu0 %v1878_v44 }
 0x2de   :  { %1315 = vmatpush1.bf16.msra.mxu1 %v1830_v35  ;;  %1690 = vmatpush3.bf16.msra.mxu0 %v1833_v36 }
 0x2df   :  { %1316 = vmatprep.subr.bf16.mxu1 %v1836_v37  ;;  %1691 = vmatprep.subr.bf16.mxu0 %v1878_v44 }
 0x2e2   :  { %1317 = vmatpush1.bf16.msra.mxu1 %v1834_v38  ;;  %1692 = vmatpush3.bf16.msra.mxu0 %v1837_v39 }
 0x2e3   :  { %1318 = vmatprep.subr.bf16.mxu1 %v1840_v40  ;;  %1693 = vmatprep.subr.bf16.mxu0 %v1878_v44 }
 0x2e6   :  { %1319 = vmatpush1.bf16.msra.mxu1 %v1838_v41  ;;  %1694 = vmatpush3.bf16.msra.mxu0 %v1841_v42 }
 0x2e7   :  { %1320 = vmatprep.subr.bf16.mxu1 %v1844_v43  ;;  %1695 = vmatprep.subr.bf16.mxu0 %v1878_v44 }
 0x2ea   :  { %1321 = vmatpush1.bf16.msra.mxu1 %v1842_v45  ;;  %1696 = vmatpush3.bf16.msra.mxu0 %v1845_v46 }
 0x2eb   :  { %1322 = vmatprep.subr.bf16.mxu1 %v1848_v47  ;;  %1697 = vmatprep.subr.bf16.mxu0 %v1878_v44 }
 0x2ee   :  { %1323 = vmatpush1.bf16.msra.mxu1 %v1846_v48  ;;  %1698 = vmatpush3.bf16.msra.mxu0 %v1849_v49 }
 0x2ef   :  { %1324 = vmatprep.subr.bf16.mxu1 %v1852_v50  ;;  %1699 = vmatprep.subr.bf16.mxu0 %v1878_v44 }
 0x2f2   :  { %1325 = vmatpush1.bf16.msra.mxu1 %v1850_v51  ;;  %1700 = vmatpush3.bf16.msra.mxu0 %v1853_v52 }
 0x2f5   :  { %1343 = vmatmul.mubr.bf16.vlgmr.msra.gmra.mrb[16].mxu1 %v838_v30  ;;  %1702 = vmatmul.mubr.bf16.vlgmr.msra.gmra.mrb[16].mxu0 %v838_v30 }
 0x3a8   :  { %v1262_v0 = vpop.f32.mrb[12].mxu1  ;;  %v1303_v44 = vpop.f32.mrb[12].mxu0 }
 0x3a9   :  { %v1263_v1 = vadd.f32 %v1262_v0, %v908_v60  ;;  %v1304_v2 = vadd.f32 %v1303_v44, %v916_v61  ;;  %v1264_v3 = vpop.f32.mrb[13].mxu1  ;;  %v1305_v4 = vpop.f32.mrb[13].mxu0 }
 0x3aa   :  { %v1265_v5 = vadd.f32 %v1264_v3, %v912_v62  ;;  %v1306_v6 = vadd.f32 %v1305_v4, %v920_v63  ;;  %v1266_v7 = vpop.f32.mrb[14].mxu1  ;;  %v1307_v8 = vpop.f32.mrb[14].mxu0 }
 0x3ab   :  { %v1391_v9 = vmax.f32 %v1263_v1, 0.0  ;;  %v1393_v10 = vmax.f32 %v1304_v2, 0.0  ;;  %v1267_v11 = vpop.f32.mrb[15].mxu1  ;;  %v1308_v12 = vpop.f32.mrb[15].mxu0 }
 0x3ac   :  { %v1392_v13 = vmax.f32 %v1265_v5, 0.0  ;;  %v1394_v14 = vmax.f32 %v1306_v6, 0.0 }
 0x3ad   :  { %1398 = vst [vmem:[#allocation2] sm:$0xff] %v1391_v9  ;;  %1400 = vst [vmem:[#allocation2 + $0x10] sm:$0xff] %v1393_v10 }
 0x3ae   :  { %1399 = vst [vmem:[#allocation2 + $0x8] sm:$0xff] %v1392_v13  ;;  %1401 = vst [vmem:[#allocation2 + $0x18] sm:$0xff] %v1394_v14 }
 0x3c8   :  { %v1344_v21 = vpop.f32.mrb[16].mxu1  ;;  %v1385_v22 = vpop.f32.mrb[16].mxu0 }
 0x3c9   :  { %v1345_v23 = vadd.f32 %v1344_v21, %v924_v18  ;;  %v1386_v24 = vadd.f32 %v1385_v22, %v932_v19  ;;  %v1346_v25 = vpop.f32.mrb[17].mxu1  ;;  %v1703_v26 = vpop.f32.mrb[17].mxu0 }
 0x3ca   :  { %v1347_v27 = vadd.f32 %v1346_v25, %v928_v20  ;;  %v1348_v28 = vpop.f32.mrb[18].mxu1  ;;  %v1388_v29 = vpop.f32.mrb[18].mxu0 }
 0x3cb   :  { %v1395_v30 = vmax.f32 %v1345_v23, 0.0  ;;  %v1397_v31 = vmax.f32 %v1386_v24, 0.0  ;;  %v1349_v32 = vpop.f32.mrb[19].mxu1  ;;  %v1704_v33 = vpop.f32.mrb[19].mxu0 }
 0x3cc   :  { %v1396_v34 = vmax.f32 %v1347_v27, 0.0 }
 0x3cd   :  { %1402 = vst [vmem:[#allocation2 + $0x20] sm:$0xff] %v1395_v30  ;;  %1404 = vst.msk [vmem:[#allocation2 + $0x30] sm:$0xff] %vm447_vm1, %v1397_v31 }
 0x3ce   :  { %1403 = vst [vmem:[#allocation2 + $0x28] sm:$0xff] %v1396_v34 }
 0x3cf   :  { %1865 = shalt.err (!%p1862_p4)
}
 0x3d0   :  { %s1866_s4 = scalar_lea.hbm %s2384_s9, 896 }
 0x3d1   :  { %p1867_p5 = scmp.ne.s32.totalorder %s2384_s9, %s1866_s4  ;;  %p1870_p6 = scmp.lt.u32.totalorder %s1866_s4, %s2384_s9 }
 0x3d3   :  { %p1872_p7 = pnand %p1870_p6, %p1867_p5 }
 0x3d5   :  { %1875 = shalt.err (!%p1872_p7)
}
 0x3d6   :  { %1414 = dma.vmem_to_hbm [thread:$0]  %s1412_s8, 896, %s2384_s9, [#allocation3]  }
 0x3d7   :  { %1876 = dma.done.wait [#allocation3], 896  }
 0x3d8   :  { %1877 = vsyncadd [#allocation3], 4294966400 }
 0x3d9   :  { %1418 = vsyncpa [#allocation3], 1 }

</bundles_post_ra>
